<compile_context>
chip_gen: v6e
topology: v6e:2x2x1
jax: 0.10.0
libtpu: 0.0.40
codegen_flags: <defaults>
</compile_context>

<pallas_src>
import functools

import jax
import jax.numpy as jnp
from jax.experimental import pallas as pl
from jax.experimental.pallas import tpu as pltpu


# ---------------------------------------------------------------------------
# Pallas kernel: hoisted input projection + fully-unrolled serial recurrence.
# ---------------------------------------------------------------------------
def _lstm_serial_kernel(x_ref, h0_ref, c0_ref, wih_ref, whh_ref, b_ref,
                        hT_ref, cT_ref):
    # x_ref:   (S*Bp, I) bf16, time-major: rows [s*Bp:(s+1)*Bp] = timestep s+1
    # h0_ref:  (Bp, H)   f32 initial hidden state (batch padded to Bp rows)
    # c0_ref:  (Bp, H)   f32 initial cell state
    # wih_ref: (I, 4H)   bf16 input->gate weights, gate column order i|f|o|g
    # whh_ref: (H, 4H)   f32 hidden->gate weights, gate column order i|f|o|g
    # b_ref:   (1, 4H)   f32 bias_ih + bias_hh, gate order i|f|o|g
    Bp, H = h0_ref.shape
    S = x_ref.shape[0] // Bp  # number of processed timesteps (= n_target - 1)

    # Hoisted input projection for all timesteps in one bf16 MXU matmul with
    # f32 accumulation, bias folded in (computed once, off the serial chain).
    gx = (jnp.dot(x_ref[...], wih_ref[...], preferred_element_type=jnp.float32)
          + b_ref[...])                           # (S*Bp, 4H) f32
    whh = whh_ref[...]                            # (H, 4H) f32

    h = h0_ref[...]                               # (Bp, H) f32, kept in vregs
    c = c0_ref[...]                               # (Bp, H) f32, kept in vregs

    # Fully unrolled (S is static & small).  Processed order = timestep
    # T-1, T-2, ..., 1, i.e. row-blocks S-1 down to 0 of the time-major gx.
    # Every per-step slice offset is a multiple of Bp (>= 8) -> tile-aligned.
    # TODO(synk): pltpu.matmul_push_rhs(whh) once + per-step matmul_acc_lhs /
    #             matmul_pop to keep the RHS resident in the MXU.
    for s in range(S - 1, -1, -1):
        g = gx[s * Bp:(s + 1) * Bp, :] + jnp.dot(
            h, whh, preferred_element_type=jnp.float32)   # (Bp, 4H)
        # One EUP pass covers i|f|o (contiguous 3H lanes); sigmoid is the
        # EUP-only tanh form (no divide on the critical path).
        sig = 0.5 * (jnp.tanh(0.5 * g[:, :3 * H]) + 1.0)
        i_g = sig[:, 0 * H:1 * H]
        f_g = sig[:, 1 * H:2 * H]
        o_g = sig[:, 2 * H:3 * H]
        g_g = jnp.tanh(g[:, 3 * H:4 * H])
        c = f_g * c + i_g * g_g
        h = o_g * jnp.tanh(c)

    hT_ref[...] = h    # == 'a' of the last processed step (timestep 1)
    cT_ref[...] = c


# ---------------------------------------------------------------------------
# Parameter construction / one-time packing (done OUTSIDE the jitted forward).
# ---------------------------------------------------------------------------
def make_lstm_serial_params(key, input_size, hidden_size):
    """Deterministic parameter init mirroring nn.LSTM / nn.Linear shapes."""
    k = 1.0 / jnp.sqrt(jnp.float32(hidden_size))
    keys = jax.random.split(key, 6)
    params = {
        "weight_ih_l0": jax.random.uniform(keys[0], (4 * hidden_size, input_size),
                                           jnp.float32, -k, k),
        "weight_hh_l0": jax.random.uniform(keys[1], (4 * hidden_size, hidden_size),
                                           jnp.float32, -k, k),
        "bias_ih_l0": jax.random.uniform(keys[2], (4 * hidden_size,),
                                         jnp.float32, -k, k),
        "bias_hh_l0": jax.random.uniform(keys[3], (4 * hidden_size,),
                                         jnp.float32, -k, k),
        # Linear(hidden_size, input_size) exists in __init__ but is unused in
        # forward(); kept here only for shape parity.
        "linear_w": jax.random.uniform(keys[4], (input_size, hidden_size),
                                       jnp.float32, -k, k),
        "linear_b": jax.random.uniform(keys[5], (input_size,),
                                       jnp.float32, -k, k),
    }
    return params


def _reorder_gate_rows(w, hidden_size):
    """Reorder PyTorch gate blocks i|f|g|o -> i|f|o|g along the leading axis."""
    H = hidden_size
    return jnp.concatenate([w[0:2 * H], w[3 * H:4 * H], w[2 * H:3 * H]], axis=0)


def pack_lstm_serial_params(params, hidden_size):
    """Pack nn.LSTM weights once: x @ W layout, gates concatenated as i|f|o|g.

    wih is cast to bf16 (feeds the hoisted, off-chain projection matmul);
    whh / bias stay f32 so the serial chain and gate math remain f32 on all
    generations (v5e has no bf16 VPU/EUP path).
    """
    wih = _reorder_gate_rows(params["weight_ih_l0"], hidden_size)   # (4H, I)
    whh = _reorder_gate_rows(params["weight_hh_l0"], hidden_size)   # (4H, H)
    b = _reorder_gate_rows(
        (params["bias_ih_l0"] + params["bias_hh_l0"])[:, None], hidden_size)[:, 0]
    return {
        "wih": wih.T.astype(jnp.bfloat16),       # (I, 4H) bf16, cols i|f|o|g
        "whh": whh.T.astype(jnp.float32),        # (H, 4H) f32
        "b": b.astype(jnp.float32).reshape(1, -1),  # (1, 4H) f32
    }


# ---------------------------------------------------------------------------
# Wrapper: layout prep (batch pad to 8 sublanes, time-major) + pallas_call.
# ---------------------------------------------------------------------------
@functools.partial(jax.jit, static_argnames=("input_size", "hidden_size"))
def lstm_serial_forward(packed, x_input, hidden_state, *, input_size, hidden_size):
    """x_input: (B, n_target*input_size); hidden_state: (h0, c0) each (1, B, H)."""
    B = x_input.shape[0]
    H = hidden_size
    I = input_size

    state = x_input.reshape(B, -1, I)               # (B, T, I)
    T = state.shape[1]
    assert T >= 2, "forward() requires n_target >= 2 (PyTorch code errors otherwise)"
    S = T - 1                                        # processed steps (skip t=0)

    # Pad batch to a full sublane multiple so per-step slices are tile-aligned.
    Bp = max(8, ((B + 7) // 8) * 8)
    pad_b = Bp - B

    # Time-major, natural order (timesteps 1..T-1); NO flip -- the kernel walks
    # the row-blocks in reverse with free static indexing.
    x_tm = jnp.swapaxes(state[:, 1:, :], 0, 1)                   # (S, B, I)
    x_tm = jnp.pad(x_tm, ((0, 0), (0, pad_b), (0, 0)))           # (S, Bp, I)
    x_tm = x_tm.reshape(S * Bp, I).astype(jnp.bfloat16)

    h0, c0 = hidden_state
    h0 = jnp.pad(h0.reshape(B, H).astype(jnp.float32), ((0, pad_b), (0, 0)))
    c0 = jnp.pad(c0.reshape(B, H).astype(jnp.float32), ((0, pad_b), (0, 0)))

    wih = packed["wih"]     # (I, 4H) bf16
    whh = packed["whh"]     # (H, 4H) f32
    b = packed["b"]         # (1, 4H) f32

    grid_spec = pltpu.PrefetchScalarGridSpec(
        num_scalar_prefetch=0,
        grid=(1,),
        in_specs=[
            pl.BlockSpec((S * Bp, I), lambda i: (0, 0)),
            pl.BlockSpec((Bp, H), lambda i: (0, 0)),
            pl.BlockSpec((Bp, H), lambda i: (0, 0)),
            pl.BlockSpec((I, 4 * H), lambda i: (0, 0)),
            pl.BlockSpec((H, 4 * H), lambda i: (0, 0)),
            pl.BlockSpec((1, 4 * H), lambda i: (0, 0)),
        ],
        out_specs=[
            pl.BlockSpec((Bp, H), lambda i: (0, 0)),
            pl.BlockSpec((Bp, H), lambda i: (0, 0)),
        ],
    )

    h_T, c_T = pl.pallas_call(
        _lstm_serial_kernel,
        grid_spec=grid_spec,
        out_shape=(
            jax.ShapeDtypeStruct((Bp, H), jnp.float32),
            jax.ShapeDtypeStruct((Bp, H), jnp.float32),
        ),
        compiler_params=pltpu.CompilerParams(
            dimension_semantics=("arbitrary",),
        ),
    )(x_tm, h0, c0, wih, whh, b)

    # Drop padded batch rows; match PyTorch output shapes:
    # a (B, 1, H) == h_T; hidden states each (1, B, H).
    h_T = h_T[:B, :]
    c_T = c_T[:B, :]
    return h_T.reshape(B, 1, H), (h_T.reshape(1, B, H), c_T.reshape(1, B, H))


# ---------------------------------------------------------------------------
# Pure-JAX reference (same math, PyTorch gate order) for a correctness check.
# ---------------------------------------------------------------------------
def lstm_serial_reference(params, x_input, hidden_state, *, input_size, hidden_size):
    B = x_input.shape[0]
    H = hidden_size
    I = input_size
    state = x_input.reshape(B, -1, I)
    T = state.shape[1]
    w_ih = params["weight_ih_l0"]
    w_hh = params["weight_hh_l0"]
    b = params["bias_ih_l0"] + params["bias_hh_l0"]
    h = hidden_state[0].reshape(B, H)
    c = hidden_state[1].reshape(B, H)
    a = None
    for t in range(T - 1, 0, -1):
        x_t = state[:, t, :]
        gates = x_t @ w_ih.T + h @ w_hh.T + b
        i_g = jax.nn.sigmoid(gates[:, 0 * H:1 * H])
        f_g = jax.nn.sigmoid(gates[:, 1 * H:2 * H])
        g_g = jnp.tanh(gates[:, 2 * H:3 * H])
        o_g = jax.nn.sigmoid(gates[:, 3 * H:4 * H])
        c = f_g * c + i_g * g_g
        h = o_g * jnp.tanh(c)
        a = h
    return a.reshape(B, 1, H), (h.reshape(1, B, H), c.reshape(1, B, H))


if __name__ == "__main__":
    input_size = 16
    hidden_size = 32
    n_target = 8
    batch = 2

    key = jax.random.PRNGKey(0)
    k_params, k_x, k_h, k_c = jax.random.split(key, 4)

    params = make_lstm_serial_params(k_params, input_size, hidden_size)
    packed = pack_lstm_serial_params(params, hidden_size)  # one-time packing

    # x_input is 2D (batch, n_target * input_size), as the module's view() implies.
    x_input = jax.random.normal(k_x, (batch, n_target * input_size), jnp.float32)
    h0 = jax.random.normal(k_h, (1, batch, hidden_size), jnp.float32)
    c0 = jax.random.normal(k_c, (1, batch, hidden_size), jnp.float32)

    a, (h_T, c_T) = lstm_serial_forward(
        packed, x_input, (h0, c0),
        input_size=input_size, hidden_size=hidden_size)
    jax.block_until_ready((a, h_T, c_T))

    a_ref, (h_ref, c_ref) = lstm_serial_reference(
        params, x_input, (h0, c0),
        input_size=input_size, hidden_size=hidden_size)

    assert a.shape == (batch, 1, hidden_size)
    assert h_T.shape == (1, batch, hidden_size)
    assert c_T.shape == (1, batch, hidden_size)
    # bf16 input projection -> slightly looser tolerance than pure-f32.
    assert jnp.allclose(a, a_ref, atol=3e-3, rtol=3e-3)
    assert jnp.allclose(h_T, h_ref, atol=3e-3, rtol=3e-3)
    assert jnp.allclose(c_T, c_ref, atol=3e-3, rtol=3e-3)

    print("KERNEL_OK")
</pallas_src>

<mosaic_0001>
module attributes {stable_mosaic.version = 11 : i64} {
  func.func @_lstm_serial_kernel(%arg0: i32, %arg1: memref<56x16xbf16, #tpu.memory_space<vmem>>, %arg2: memref<8x32xf32, #tpu.memory_space<vmem>>, %arg3: memref<8x32xf32, #tpu.memory_space<vmem>>, %arg4: memref<16x128xbf16, #tpu.memory_space<vmem>>, %arg5: memref<32x128xf32, #tpu.memory_space<vmem>>, %arg6: memref<1x128xf32, #tpu.memory_space<vmem>>, %arg7: memref<8x32xf32, #tpu.memory_space<vmem>>, %arg8: memref<8x32xf32, #tpu.memory_space<vmem>>) attributes {dimension_semantics = [#tpu.dimension_semantics<arbitrary>], iteration_bounds = array<i64: 1>, scalar_prefetch = 0 : i64, scratch_operands = 0 : i64, tpu.core_type = #tpu.core_type<tc>, window_params = [{pipeline_mode = #tpu.pipeline_mode<synchronous>, transform_indices = @transform_0, window_bounds = array<i64: 56, 16>}, {pipeline_mode = #tpu.pipeline_mode<synchronous>, transform_indices = @transform_1, window_bounds = array<i64: 8, 32>}, {pipeline_mode = #tpu.pipeline_mode<synchronous>, transform_indices = @transform_2, window_bounds = array<i64: 8, 32>}, {pipeline_mode = #tpu.pipeline_mode<synchronous>, transform_indices = @transform_3, window_bounds = array<i64: 16, 128>}, {pipeline_mode = #tpu.pipeline_mode<synchronous>, transform_indices = @transform_4, window_bounds = array<i64: 32, 128>}, {pipeline_mode = #tpu.pipeline_mode<synchronous>, transform_indices = @transform_5, window_bounds = array<i64: 1, 128>}, {pipeline_mode = #tpu.pipeline_mode<synchronous>, transform_indices = @transform_6, window_bounds = array<i64: 8, 32>}, {pipeline_mode = #tpu.pipeline_mode<synchronous>, transform_indices = @transform_7, window_bounds = array<i64: 8, 32>}]} {
    %c0 = arith.constant 0 : index
    %c0_0 = arith.constant 0 : index
    %0 = vector.load %arg1[%c0, %c0_0] : memref<56x16xbf16, #tpu.memory_space<vmem>>, vector<56x16xbf16>
    %c0_1 = arith.constant 0 : index
    %c0_2 = arith.constant 0 : index
    %1 = vector.load %arg4[%c0_1, %c0_2] : memref<16x128xbf16, #tpu.memory_space<vmem>>, vector<16x128xbf16>
    %cst = arith.constant dense<0.000000e+00> : vector<56x128xf32>
    %2 = tpu.matmul %0, %1, %cst {dimension_numbers = #tpu.dot_dimension_numbers<[1], [0], [0], [1], [0, 0, 1, 1], [], []>} : vector<56x16xbf16>, vector<16x128xbf16>, vector<56x128xf32> -> vector<56x128xf32>
    %c0_3 = arith.constant 0 : index
    %c0_4 = arith.constant 0 : index
    %3 = vector.load %arg6[%c0_3, %c0_4] : memref<1x128xf32, #tpu.memory_space<vmem>>, vector<1x128xf32>
    %4 = vector.broadcast %3 : vector<1x128xf32> to vector<56x128xf32>
    %5 = arith.addf %2, %4 : vector<56x128xf32>
    %c0_5 = arith.constant 0 : index
    %c0_6 = arith.constant 0 : index
    %6 = vector.load %arg5[%c0_5, %c0_6] : memref<32x128xf32, #tpu.memory_space<vmem>>, vector<32x128xf32>
    %c0_7 = arith.constant 0 : index
    %c0_8 = arith.constant 0 : index
    %7 = vector.load %arg2[%c0_7, %c0_8] : memref<8x32xf32, #tpu.memory_space<vmem>>, vector<8x32xf32>
    %c0_9 = arith.constant 0 : index
    %c0_10 = arith.constant 0 : index
    %8 = vector.load %arg3[%c0_9, %c0_10] : memref<8x32xf32, #tpu.memory_space<vmem>>, vector<8x32xf32>
    %9 = vector.extract_strided_slice %5 {offsets = [48, 0], sizes = [8, 128], strides = [1, 1]} : vector<56x128xf32> to vector<8x128xf32>
    %cst_11 = arith.constant dense<0.000000e+00> : vector<8x128xf32>
    %10 = tpu.matmul %7, %6, %cst_11 {dimension_numbers = #tpu.dot_dimension_numbers<[1], [0], [0], [1], [0, 0, 1, 1], [], []>} : vector<8x32xf32>, vector<32x128xf32>, vector<8x128xf32> -> vector<8x128xf32>
    %11 = arith.addf %9, %10 : vector<8x128xf32>
    %12 = vector.extract_strided_slice %11 {offsets = [0, 0], sizes = [8, 96], strides = [1, 1]} : vector<8x128xf32> to vector<8x96xf32>
    %cst_12 = arith.constant 5.000000e-01 : f32
    %13 = vector.broadcast %cst_12 : f32 to vector<8x96xf32>
    %14 = arith.mulf %13, %12 : vector<8x96xf32>
    %15 = math.tanh %14 : vector<8x96xf32>
    %cst_13 = arith.constant 1.000000e+00 : f32
    %16 = vector.broadcast %cst_13 : f32 to vector<8x96xf32>
    %17 = arith.addf %15, %16 : vector<8x96xf32>
    %cst_14 = arith.constant 5.000000e-01 : f32
    %18 = vector.broadcast %cst_14 : f32 to vector<8x96xf32>
    %19 = arith.mulf %18, %17 : vector<8x96xf32>
    %20 = vector.extract_strided_slice %19 {offsets = [0, 0], sizes = [8, 32], strides = [1, 1]} : vector<8x96xf32> to vector<8x32xf32>
    %21 = vector.extract_strided_slice %19 {offsets = [0, 32], sizes = [8, 32], strides = [1, 1]} : vector<8x96xf32> to vector<8x32xf32>
    %22 = vector.extract_strided_slice %19 {offsets = [0, 64], sizes = [8, 32], strides = [1, 1]} : vector<8x96xf32> to vector<8x32xf32>
    %23 = vector.extract_strided_slice %11 {offsets = [0, 96], sizes = [8, 32], strides = [1, 1]} : vector<8x128xf32> to vector<8x32xf32>
    %24 = math.tanh %23 : vector<8x32xf32>
    %25 = arith.mulf %21, %8 : vector<8x32xf32>
    %26 = arith.mulf %20, %24 : vector<8x32xf32>
    %27 = arith.addf %25, %26 : vector<8x32xf32>
    %28 = math.tanh %27 : vector<8x32xf32>
    %29 = arith.mulf %22, %28 : vector<8x32xf32>
    %30 = vector.extract_strided_slice %5 {offsets = [40, 0], sizes = [8, 128], strides = [1, 1]} : vector<56x128xf32> to vector<8x128xf32>
    %cst_15 = arith.constant dense<0.000000e+00> : vector<8x128xf32>
    %31 = tpu.matmul %29, %6, %cst_15 {dimension_numbers = #tpu.dot_dimension_numbers<[1], [0], [0], [1], [0, 0, 1, 1], [], []>} : vector<8x32xf32>, vector<32x128xf32>, vector<8x128xf32> -> vector<8x128xf32>
    %32 = arith.addf %30, %31 : vector<8x128xf32>
    %33 = vector.extract_strided_slice %32 {offsets = [0, 0], sizes = [8, 96], strides = [1, 1]} : vector<8x128xf32> to vector<8x96xf32>
    %cst_16 = arith.constant 5.000000e-01 : f32
    %34 = vector.broadcast %cst_16 : f32 to vector<8x96xf32>
    %35 = arith.mulf %34, %33 : vector<8x96xf32>
    %36 = math.tanh %35 : vector<8x96xf32>
    %cst_17 = arith.constant 1.000000e+00 : f32
    %37 = vector.broadcast %cst_17 : f32 to vector<8x96xf32>
    %38 = arith.addf %36, %37 : vector<8x96xf32>
    %cst_18 = arith.constant 5.000000e-01 : f32
    %39 = vector.broadcast %cst_18 : f32 to vector<8x96xf32>
    %40 = arith.mulf %39, %38 : vector<8x96xf32>
    %41 = vector.extract_strided_slice %40 {offsets = [0, 0], sizes = [8, 32], strides = [1, 1]} : vector<8x96xf32> to vector<8x32xf32>
    %42 = vector.extract_strided_slice %40 {offsets = [0, 32], sizes = [8, 32], strides = [1, 1]} : vector<8x96xf32> to vector<8x32xf32>
    %43 = vector.extract_strided_slice %40 {offsets = [0, 64], sizes = [8, 32], strides = [1, 1]} : vector<8x96xf32> to vector<8x32xf32>
    %44 = vector.extract_strided_slice %32 {offsets = [0, 96], sizes = [8, 32], strides = [1, 1]} : vector<8x128xf32> to vector<8x32xf32>
    %45 = math.tanh %44 : vector<8x32xf32>
    %46 = arith.mulf %42, %27 : vector<8x32xf32>
    %47 = arith.mulf %41, %45 : vector<8x32xf32>
    %48 = arith.addf %46, %47 : vector<8x32xf32>
    %49 = math.tanh %48 : vector<8x32xf32>
    %50 = arith.mulf %43, %49 : vector<8x32xf32>
    %51 = vector.extract_strided_slice %5 {offsets = [32, 0], sizes = [8, 128], strides = [1, 1]} : vector<56x128xf32> to vector<8x128xf32>
    %cst_19 = arith.constant dense<0.000000e+00> : vector<8x128xf32>
    %52 = tpu.matmul %50, %6, %cst_19 {dimension_numbers = #tpu.dot_dimension_numbers<[1], [0], [0], [1], [0, 0, 1, 1], [], []>} : vector<8x32xf32>, vector<32x128xf32>, vector<8x128xf32> -> vector<8x128xf32>
    %53 = arith.addf %51, %52 : vector<8x128xf32>
    %54 = vector.extract_strided_slice %53 {offsets = [0, 0], sizes = [8, 96], strides = [1, 1]} : vector<8x128xf32> to vector<8x96xf32>
    %cst_20 = arith.constant 5.000000e-01 : f32
    %55 = vector.broadcast %cst_20 : f32 to vector<8x96xf32>
    %56 = arith.mulf %55, %54 : vector<8x96xf32>
    %57 = math.tanh %56 : vector<8x96xf32>
    %cst_21 = arith.constant 1.000000e+00 : f32
    %58 = vector.broadcast %cst_21 : f32 to vector<8x96xf32>
    %59 = arith.addf %57, %58 : vector<8x96xf32>
    %cst_22 = arith.constant 5.000000e-01 : f32
    %60 = vector.broadcast %cst_22 : f32 to vector<8x96xf32>
    %61 = arith.mulf %60, %59 : vector<8x96xf32>
    %62 = vector.extract_strided_slice %61 {offsets = [0, 0], sizes = [8, 32], strides = [1, 1]} : vector<8x96xf32> to vector<8x32xf32>
    %63 = vector.extract_strided_slice %61 {offsets = [0, 32], sizes = [8, 32], strides = [1, 1]} : vector<8x96xf32> to vector<8x32xf32>
    %64 = vector.extract_strided_slice %61 {offsets = [0, 64], sizes = [8, 32], strides = [1, 1]} : vector<8x96xf32> to vector<8x32xf32>
    %65 = vector.extract_strided_slice %53 {offsets = [0, 96], sizes = [8, 32], strides = [1, 1]} : vector<8x128xf32> to vector<8x32xf32>
    %66 = math.tanh %65 : vector<8x32xf32>
    %67 = arith.mulf %63, %48 : vector<8x32xf32>
    %68 = arith.mulf %62, %66 : vector<8x32xf32>
    %69 = arith.addf %67, %68 : vector<8x32xf32>
    %70 = math.tanh %69 : vector<8x32xf32>
    %71 = arith.mulf %64, %70 : vector<8x32xf32>
    %72 = vector.extract_strided_slice %5 {offsets = [24, 0], sizes = [8, 128], strides = [1, 1]} : vector<56x128xf32> to vector<8x128xf32>
    %cst_23 = arith.constant dense<0.000000e+00> : vector<8x128xf32>
    %73 = tpu.matmul %71, %6, %cst_23 {dimension_numbers = #tpu.dot_dimension_numbers<[1], [0], [0], [1], [0, 0, 1, 1], [], []>} : vector<8x32xf32>, vector<32x128xf32>, vector<8x128xf32> -> vector<8x128xf32>
    %74 = arith.addf %72, %73 : vector<8x128xf32>
    %75 = vector.extract_strided_slice %74 {offsets = [0, 0], sizes = [8, 96], strides = [1, 1]} : vector<8x128xf32> to vector<8x96xf32>
    %cst_24 = arith.constant 5.000000e-01 : f32
    %76 = vector.broadcast %cst_24 : f32 to vector<8x96xf32>
    %77 = arith.mulf %76, %75 : vector<8x96xf32>
    %78 = math.tanh %77 : vector<8x96xf32>
    %cst_25 = arith.constant 1.000000e+00 : f32
    %79 = vector.broadcast %cst_25 : f32 to vector<8x96xf32>
    %80 = arith.addf %78, %79 : vector<8x96xf32>
    %cst_26 = arith.constant 5.000000e-01 : f32
    %81 = vector.broadcast %cst_26 : f32 to vector<8x96xf32>
    %82 = arith.mulf %81, %80 : vector<8x96xf32>
    %83 = vector.extract_strided_slice %82 {offsets = [0, 0], sizes = [8, 32], strides = [1, 1]} : vector<8x96xf32> to vector<8x32xf32>
    %84 = vector.extract_strided_slice %82 {offsets = [0, 32], sizes = [8, 32], strides = [1, 1]} : vector<8x96xf32> to vector<8x32xf32>
    %85 = vector.extract_strided_slice %82 {offsets = [0, 64], sizes = [8, 32], strides = [1, 1]} : vector<8x96xf32> to vector<8x32xf32>
    %86 = vector.extract_strided_slice %74 {offsets = [0, 96], sizes = [8, 32], strides = [1, 1]} : vector<8x128xf32> to vector<8x32xf32>
    %87 = math.tanh %86 : vector<8x32xf32>
    %88 = arith.mulf %84, %69 : vector<8x32xf32>
    %89 = arith.mulf %83, %87 : vector<8x32xf32>
    %90 = arith.addf %88, %89 : vector<8x32xf32>
    %91 = math.tanh %90 : vector<8x32xf32>
    %92 = arith.mulf %85, %91 : vector<8x32xf32>
    %93 = vector.extract_strided_slice %5 {offsets = [16, 0], sizes = [8, 128], strides = [1, 1]} : vector<56x128xf32> to vector<8x128xf32>
    %cst_27 = arith.constant dense<0.000000e+00> : vector<8x128xf32>
    %94 = tpu.matmul %92, %6, %cst_27 {dimension_numbers = #tpu.dot_dimension_numbers<[1], [0], [0], [1], [0, 0, 1, 1], [], []>} : vector<8x32xf32>, vector<32x128xf32>, vector<8x128xf32> -> vector<8x128xf32>
    %95 = arith.addf %93, %94 : vector<8x128xf32>
    %96 = vector.extract_strided_slice %95 {offsets = [0, 0], sizes = [8, 96], strides = [1, 1]} : vector<8x128xf32> to vector<8x96xf32>
    %cst_28 = arith.constant 5.000000e-01 : f32
    %97 = vector.broadcast %cst_28 : f32 to vector<8x96xf32>
    %98 = arith.mulf %97, %96 : vector<8x96xf32>
    %99 = math.tanh %98 : vector<8x96xf32>
    %cst_29 = arith.constant 1.000000e+00 : f32
    %100 = vector.broadcast %cst_29 : f32 to vector<8x96xf32>
    %101 = arith.addf %99, %100 : vector<8x96xf32>
    %cst_30 = arith.constant 5.000000e-01 : f32
    %102 = vector.broadcast %cst_30 : f32 to vector<8x96xf32>
    %103 = arith.mulf %102, %101 : vector<8x96xf32>
    %104 = vector.extract_strided_slice %103 {offsets = [0, 0], sizes = [8, 32], strides = [1, 1]} : vector<8x96xf32> to vector<8x32xf32>
    %105 = vector.extract_strided_slice %103 {offsets = [0, 32], sizes = [8, 32], strides = [1, 1]} : vector<8x96xf32> to vector<8x32xf32>
    %106 = vector.extract_strided_slice %103 {offsets = [0, 64], sizes = [8, 32], strides = [1, 1]} : vector<8x96xf32> to vector<8x32xf32>
    %107 = vector.extract_strided_slice %95 {offsets = [0, 96], sizes = [8, 32], strides = [1, 1]} : vector<8x128xf32> to vector<8x32xf32>
    %108 = math.tanh %107 : vector<8x32xf32>
    %109 = arith.mulf %105, %90 : vector<8x32xf32>
    %110 = arith.mulf %104, %108 : vector<8x32xf32>
    %111 = arith.addf %109, %110 : vector<8x32xf32>
    %112 = math.tanh %111 : vector<8x32xf32>
    %113 = arith.mulf %106, %112 : vector<8x32xf32>
    %114 = vector.extract_strided_slice %5 {offsets = [8, 0], sizes = [8, 128], strides = [1, 1]} : vector<56x128xf32> to vector<8x128xf32>
    %cst_31 = arith.constant dense<0.000000e+00> : vector<8x128xf32>
    %115 = tpu.matmul %113, %6, %cst_31 {dimension_numbers = #tpu.dot_dimension_numbers<[1], [0], [0], [1], [0, 0, 1, 1], [], []>} : vector<8x32xf32>, vector<32x128xf32>, vector<8x128xf32> -> vector<8x128xf32>
    %116 = arith.addf %114, %115 : vector<8x128xf32>
    %117 = vector.extract_strided_slice %116 {offsets = [0, 0], sizes = [8, 96], strides = [1, 1]} : vector<8x128xf32> to vector<8x96xf32>
    %cst_32 = arith.constant 5.000000e-01 : f32
    %118 = vector.broadcast %cst_32 : f32 to vector<8x96xf32>
    %119 = arith.mulf %118, %117 : vector<8x96xf32>
    %120 = math.tanh %119 : vector<8x96xf32>
    %cst_33 = arith.constant 1.000000e+00 : f32
    %121 = vector.broadcast %cst_33 : f32 to vector<8x96xf32>
    %122 = arith.addf %120, %121 : vector<8x96xf32>
    %cst_34 = arith.constant 5.000000e-01 : f32
    %123 = vector.broadcast %cst_34 : f32 to vector<8x96xf32>
    %124 = arith.mulf %123, %122 : vector<8x96xf32>
    %125 = vector.extract_strided_slice %124 {offsets = [0, 0], sizes = [8, 32], strides = [1, 1]} : vector<8x96xf32> to vector<8x32xf32>
    %126 = vector.extract_strided_slice %124 {offsets = [0, 32], sizes = [8, 32], strides = [1, 1]} : vector<8x96xf32> to vector<8x32xf32>
    %127 = vector.extract_strided_slice %124 {offsets = [0, 64], sizes = [8, 32], strides = [1, 1]} : vector<8x96xf32> to vector<8x32xf32>
    %128 = vector.extract_strided_slice %116 {offsets = [0, 96], sizes = [8, 32], strides = [1, 1]} : vector<8x128xf32> to vector<8x32xf32>
    %129 = math.tanh %128 : vector<8x32xf32>
    %130 = arith.mulf %126, %111 : vector<8x32xf32>
    %131 = arith.mulf %125, %129 : vector<8x32xf32>
    %132 = arith.addf %130, %131 : vector<8x32xf32>
    %133 = math.tanh %132 : vector<8x32xf32>
    %134 = arith.mulf %127, %133 : vector<8x32xf32>
    %135 = vector.extract_strided_slice %5 {offsets = [0, 0], sizes = [8, 128], strides = [1, 1]} : vector<56x128xf32> to vector<8x128xf32>
    %cst_35 = arith.constant dense<0.000000e+00> : vector<8x128xf32>
    %136 = tpu.matmul %134, %6, %cst_35 {dimension_numbers = #tpu.dot_dimension_numbers<[1], [0], [0], [1], [0, 0, 1, 1], [], []>} : vector<8x32xf32>, vector<32x128xf32>, vector<8x128xf32> -> vector<8x128xf32>
    %137 = arith.addf %135, %136 : vector<8x128xf32>
    %138 = vector.extract_strided_slice %137 {offsets = [0, 0], sizes = [8, 96], strides = [1, 1]} : vector<8x128xf32> to vector<8x96xf32>
    %cst_36 = arith.constant 5.000000e-01 : f32
    %139 = vector.broadcast %cst_36 : f32 to vector<8x96xf32>
    %140 = arith.mulf %139, %138 : vector<8x96xf32>
    %141 = math.tanh %140 : vector<8x96xf32>
    %cst_37 = arith.constant 1.000000e+00 : f32
    %142 = vector.broadcast %cst_37 : f32 to vector<8x96xf32>
    %143 = arith.addf %141, %142 : vector<8x96xf32>
    %cst_38 = arith.constant 5.000000e-01 : f32
    %144 = vector.broadcast %cst_38 : f32 to vector<8x96xf32>
    %145 = arith.mulf %144, %143 : vector<8x96xf32>
    %146 = vector.extract_strided_slice %145 {offsets = [0, 0], sizes = [8, 32], strides = [1, 1]} : vector<8x96xf32> to vector<8x32xf32>
    %147 = vector.extract_strided_slice %145 {offsets = [0, 32], sizes = [8, 32], strides = [1, 1]} : vector<8x96xf32> to vector<8x32xf32>
    %148 = vector.extract_strided_slice %145 {offsets = [0, 64], sizes = [8, 32], strides = [1, 1]} : vector<8x96xf32> to vector<8x32xf32>
    %149 = vector.extract_strided_slice %137 {offsets = [0, 96], sizes = [8, 32], strides = [1, 1]} : vector<8x128xf32> to vector<8x32xf32>
    %150 = math.tanh %149 : vector<8x32xf32>
    %151 = arith.mulf %147, %132 : vector<8x32xf32>
    %152 = arith.mulf %146, %150 : vector<8x32xf32>
    %153 = arith.addf %151, %152 : vector<8x32xf32>
    %154 = math.tanh %153 : vector<8x32xf32>
    %155 = arith.mulf %148, %154 : vector<8x32xf32>
    %c0_39 = arith.constant 0 : index
    %c0_40 = arith.constant 0 : index
    %156 = vector.load %arg7[%c0_39, %c0_40] : memref<8x32xf32, #tpu.memory_space<vmem>>, vector<8x32xf32>
    tpu.vector_store %arg7[%c0_39, %c0_40], %155 {strides = array<i32>} : memref<8x32xf32, #tpu.memory_space<vmem>>, vector<8x32xf32>,
    %c0_41 = arith.constant 0 : index
    %c0_42 = arith.constant 0 : index
    %157 = vector.load %arg8[%c0_41, %c0_42] : memref<8x32xf32, #tpu.memory_space<vmem>>, vector<8x32xf32>
    tpu.vector_store %arg8[%c0_41, %c0_42], %153 {strides = array<i32>} : memref<8x32xf32, #tpu.memory_space<vmem>>, vector<8x32xf32>,
    return
  }
  func.func @transform_0(%arg0: i32) -> (i32, i32) {
    %c0_i32 = arith.constant 0 : i32
    %c0_i32_0 = arith.constant 0 : i32
    %c0_i32_1 = arith.constant 0 : i32
    return %c0_i32, %c0_i32_0 : i32, i32
  }
  func.func @transform_1(%arg0: i32) -> (i32, i32) {
    %c0_i32 = arith.constant 0 : i32
    %c0_i32_0 = arith.constant 0 : i32
    %c0_i32_1 = arith.constant 0 : i32
    return %c0_i32, %c0_i32_0 : i32, i32
  }
  func.func @transform_2(%arg0: i32) -> (i32, i32) {
    %c0_i32 = arith.constant 0 : i32
    %c0_i32_0 = arith.constant 0 : i32
    %c0_i32_1 = arith.constant 0 : i32
    return %c0_i32, %c0_i32_0 : i32, i32
  }
  func.func @transform_3(%arg0: i32) -> (i32, i32) {
    %c0_i32 = arith.constant 0 : i32
    %c0_i32_0 = arith.constant 0 : i32
    %c0_i32_1 = arith.constant 0 : i32
    return %c0_i32, %c0_i32_0 : i32, i32
  }
  func.func @transform_4(%arg0: i32) -> (i32, i32) {
    %c0_i32 = arith.constant 0 : i32
    %c0_i32_0 = arith.constant 0 : i32
    %c0_i32_1 = arith.constant 0 : i32
    return %c0_i32, %c0_i32_0 : i32, i32
  }
  func.func @transform_5(%arg0: i32) -> (i32, i32) {
    %c0_i32 = arith.constant 0 : i32
    %c0_i32_0 = arith.constant 0 : i32
    %c0_i32_1 = arith.constant 0 : i32
    return %c0_i32, %c0_i32_0 : i32, i32
  }
  func.func @transform_6(%arg0: i32) -> (i32, i32) {
    %c0_i32 = arith.constant 0 : i32
    %c0_i32_0 = arith.constant 0 : i32
    %c0_i32_1 = arith.constant 0 : i32
    return %c0_i32, %c0_i32_0 : i32, i32
  }
  func.func @transform_7(%arg0: i32) -> (i32, i32) {
    %c0_i32 = arith.constant 0 : i32
    %c0_i32_0 = arith.constant 0 : i32
    %c0_i32_1 = arith.constant 0 : i32
    return %c0_i32, %c0_i32_0 : i32, i32
  }
}

</mosaic_0001>

<bundles_post_ra>
// kernel: lstm_serial_forward.1
= control target key start
LH: loop header
LB: loop body
LE: loop exit
PB: predicated region body
PF: predicated region fallthrough
CT: control target
= control target key end

     0   :  { %vm66_vm0 = vcmask 130048   ;;  %v1052_v1 = vmov 0.0   ;;  %vm1053_vm1 = vmmov 0   ;;  %vm149_vm2 = vcmask 261120   ;;  %s1056_s21 = smov 96   ;;  %s1274_s3 = inlined_call_operand.vmem [shape: bf16[16,128], index: 3, kind: input, shape index: {}]   ;;  %s1275_s0 = inlined_call_operand.vmem [shape: bf16[56,16], index: 0, kind: input, shape index: {}]   ;;  %s1276_s4 = inlined_call_operand.vmem [shape: f32[32,128], index: 4, kind: input, shape index: {}]   ;;  %s1277_s1 = inlined_call_operand.vmem [shape: f32[8,32], index: 1, kind: input, shape index: {}]   ;;  %s1278_s5 = inlined_call_operand.vmem [shape: f32[1,128], index: 5, kind: input, shape index: {}]   ;;  %s1279_s2 = inlined_call_operand.vmem [shape: f32[8,32], index: 2, kind: input, shape index: {}]   ;;  %s1280_s7 = inlined_call_operand.vmem [shape: f32[8,32], index: 7, kind: output, shape index: {1}]   ;;  %s1281_s6 = inlined_call_operand.vmem [shape: f32[8,32], index: 6, kind: output, shape index: {0}]  }
   0x1   :  { %v1005_v0 = vld [vmem:[%s1274_s3] sm:$0xff]   ;;  %923 = vmatprep.subr.mxu1 %v1052_v1  ;;  %931 = vmatprep.mubr.msk.f32.mxu1 %vm1053_vm1, %v1052_v1  ;;  %v1007_v3 = vld [vmem:[%s1275_s0 + $0x8] sm:$0xff]   ;;  %v1113_v4 = vld [vmem:[%s1276_s4 + $0x18] sm:$0xff] }
   0x2   :  { %v1006_v2 = vld [vmem:[%s1275_s0] sm:$0xff]   ;;  %913 = vmatprep.subr.bf16.mxu0 %v1005_v0  ;;  %v1118_v5 = vld [vmem:[%s1276_s4 + $0x10] sm:$0xff]  ;;  %924 = vmatpush3.msra.mxu1 %v1113_v4  ;;  %v1129_v7 = vld [vmem:[%s1276_s4 + $0x8] sm:$0xff] }
   0x3   :  { %914 = vmatpush3.bf16.msra.mxu0 %v1005_v0  ;;  %915 = vmatprep.mubr.msk.bf16.mxu0 %vm66_vm0, %v1006_v2  ;;  %v1008_v6 = vld [vmem:[%s1275_s0 + $0x10] sm:$0xff]   ;;  %v1138_v8 = vld [vmem:[%s1276_s4] sm:$0xff]  ;;  %v1009_v10 = vld [vmem:[%s1275_s0 + $0x18] ss:$0 sps:$4 sm:$0xff]   ;;  %s1054_s4 = smov 32  }
   0x4   :  { %945 = vmatprep.subr.mxu0 %v1052_v1  ;;  %925 = vmatprep.subr.mxu1 %v1052_v1  ;;  %v147_v9 = vld [vmem:[%s1277_s1] sm:$0xff] }
   0x5   :  { %926 = vmatpush3.msra.mxu1 %v1118_v5  ;;  %v856_v11 = vld [vmem:[%s1278_s5] ss:$0 sm:$0xff] }
   0x6   :  { %916 = vmatmul.mubr.msk.bf16.vlgmr.msra.gmra.mxu0 %vm66_vm0, %v1007_v3  ;;  %927 = vmatprep.subr.mxu1 %v1052_v1  ;;  %v148_v29 = vld [vmem:[%s1279_s2] sm:$0xff]  ;;  %s1055_s2 = smov 64  }
   0x7   :  { %919 = vmatprep.mubr.msk.bf16.mxu0 %vm66_vm0, %v1008_v6  ;;  %928 = vmatpush3.msra.mxu1 %v1129_v7 }
   0x8   :  { %946 = vmatpush3.msra.mxu0 %v1113_v4  ;;  %929 = vmatprep.subr.mxu1 %v1052_v1 }
   0x9   :  { %947 = vmatprep.subr.mxu0 %v1052_v1  ;;  %930 = vmatpush3.msra.mxu1 %v1138_v8 }
   0xa   :  { %948 = vmatpush3.msra.mxu0 %v1118_v5  ;;  %932 = vmatmul.mubr.msk.f32.vlgmr.msra.gmra.mxu1 %vm149_vm2, %v147_v9 }
   0xb   :  { %934 = vmatprep.subr.mxu1 %v1052_v1  ;;  %942 = vmatprep.mubr.msk.f32.mxu1 %vm1053_vm1, %v1052_v1 }
   0xc   :  { %935 = vmatpush3.msra.mxu1 %v1113_v4  ;;  %949 = vmatprep.subr.mxu0 %v1052_v1 }
   0xd   :  { %936 = vmatprep.subr.mxu1 %v1052_v1  ;;  %950 = vmatpush3.msra.mxu0 %v1129_v7 }
   0xe   :  { %920 = vmatmul.mubr.msk.bf16.gmra.mxu0 %vm66_vm0, %v1009_v10  ;;  %937 = vmatpush3.msra.mxu1 %v1118_v5 }
   0xf   :  { %938 = vmatprep.subr.mxu1 %v1052_v1  ;;  %951 = vmatprep.subr.mxu0 %v1052_v1 }
  0x10   :  { %939 = vmatpush3.msra.mxu1 %v1129_v7  ;;  %952 = vmatpush3.msra.mxu0 %v1138_v8 }
  0x11   :  { %940 = vmatprep.subr.mxu1 %v1052_v1  ;;  %953 = vmatprep.mubr.msk.f32.mxu0 %vm1053_vm1, %v1052_v1 }
  0x12   :  { %941 = vmatpush3.msra.mxu1 %v1138_v8  ;;  %967 = vmatprep.subr.mxu0 %v1052_v1 }
  0x13   :  { %956 = vmatprep.subr.mxu1 %v1052_v1 }
  0xc6   :  { %v917_v12 = vpop.f32.mrf.mxu0 }
  0xc7   :  { %v1175_v13 = vadd.f32 %v917_v12, %v856_v11 }
  0xc8   :  { %v113_v14 = vpop.f32.mrf.mxu0 }
  0xc9   :  { %v1177_v15 = vadd.f32 %v856_v11, %v113_v14 }
  0xca   :  { %v918_v16 = vpop.f32.mrf.mxu0  ;;  %v219_v18 = vpop.f32.mrf.mxu1 }
  0xcb   :  { %v1179_v17 = vadd.f32 %v918_v16, %v856_v11 }
  0xcc   :  { %v116_v19 = vpop.f32.mrf.mxu0  ;;  %v933_v21 = vpop.f32.mrf.mxu1 }
  0xcd   :  { %v1181_v20 = vadd.f32 %v856_v11, %v116_v19 }
  0xce   :  { %v921_v22 = vpop.f32.mrf.mxu0 }
  0xcf   :  { %v138_v23 = vadd.f32 %v921_v22, %v856_v11 }
  0xd0   :  { %v129_v24 = vpop.f32.mrf.mxu0 }
  0xd1   :  { %v223_v25 = vadd.f32 %v219_v18, %v138_v23  ;;  %v1183_v26 = vadd.f32 %v856_v11, %v129_v24 }
  0xd2   :  { %v922_v27 = vpop.f32.mrf.mxu0 }
  0xd3   :  { %1010 = vtanh.f32 %v223_v25  ;;  %v224_v30 = vmul.f32 0.5, %v223_v25 }
  0xd4   :  { %v132_v44 = vpop.f32.mrf.mxu0 }
  0xd5   :  { %1012 = vtanh.f32 %v224_v30  ;;  %v133_v45 = vadd.f32 %v856_v11, %v132_v44 }
  0xe0   :  { %v1011_v28 = vpop.eup %1010 }
  0xe1   :  { %235 = vrot.lane.b32.xlu0 %v1011_v28, %s1054_s4 }
  0xe2   :  { %v1013_v31 = vpop.eup %1012 }
  0xe3   :  { %v226_v32 = vadd.f32 1.0, %v1013_v31 }
  0xe5   :  { %230 = vrot.lane.b32.xlu0 %v148_v29, %s1054_s4  ;;  %v227_v33 = vmul.f32 0.5, %v226_v32 }
 0x153   :  { %v236_v34 = vpop.permute.xlu0 %235 }
 0x154   :  { %v238_v35 = vmul.f32 %v236_v34, %v227_v33 }
 0x156   :  { %240 = vrot.lane.b32.xlu1 %v238_v35, %s1054_s4 }
 0x157   :  { %v231_v36 = vpop.permute.xlu0 %230 }
 0x158   :  { %v233_v37 = vmul.f32 %v231_v36, %v227_v33 }
 0x1c8   :  { %v241_v38 = vpop.permute.xlu1 %240 }
 0x1c9   :  { %v243_v39 = vadd.f32 %v241_v38, %v233_v37 }
 0x1cb   :  { %1014 = vtanh.f32 %v243_v39 }
 0x1d8   :  { %v1015_v40 = vpop.eup %1014 }
 0x1d9   :  { %246 = vrot.lane.b32.xlu1 %v1015_v40, %s1054_s4 }
 0x24b   :  { %v247_v41 = vpop.permute.xlu1 %246 }
 0x24c   :  { %v249_v42 = vmul.f32 %v247_v41, %v227_v33 }
 0x24e   :  { %251 = vrot.lane.b32.xlu0 %v249_v42, %s1055_s2 }
 0x2c0   :  { %v252_v43 = vpop.permute.xlu0 %251 }
 0x2c1   :  { %943 = vmatmul.mubr.msk.f32.vlgmr.msra.gmra.mxu1 %vm149_vm2, %v252_v43 }
 0x2c2   :  { %957 = vmatpush3.msra.mxu1 %v1113_v4  ;;  %964 = vmatprep.mubr.msk.f32.mxu1 %vm1053_vm1, %v1052_v1 }
 0x2c3   :  { %958 = vmatprep.subr.mxu1 %v1052_v1 }
 0x2c4   :  { %959 = vmatpush3.msra.mxu1 %v1118_v5 }
 0x2c5   :  { %960 = vmatprep.subr.mxu1 %v1052_v1 }
 0x2c6   :  { %961 = vmatpush3.msra.mxu1 %v1129_v7 }
 0x2c7   :  { %962 = vmatprep.subr.mxu1 %v1052_v1 }
 0x2c8   :  { %963 = vmatpush3.msra.mxu1 %v1138_v8 }
 0x2c9   :  { %978 = vmatprep.subr.mxu1 %v1052_v1 }
 0x381   :  { %v321_v46 = vpop.f32.mrf.mxu1 }
 0x382   :  { %v325_v47 = vadd.f32 %v321_v46, %v133_v45 }
 0x383   :  { %v944_v48 = vpop.f32.mrf.mxu1 }
 0x384   :  { %1016 = vtanh.f32 %v325_v47  ;;  %v326_v50 = vmul.f32 0.5, %v325_v47 }
 0x386   :  { %1018 = vtanh.f32 %v326_v50 }
 0x391   :  { %v1017_v49 = vpop.eup %1016 }
 0x392   :  { %333 = vrot.lane.b32.xlu1 %v1017_v49, %s1054_s4 }
 0x393   :  { %v1019_v51 = vpop.eup %1018 }
 0x394   :  { %v328_v52 = vadd.f32 1.0, %v1019_v51 }
 0x396   :  { %v329_v53 = vmul.f32 0.5, %v328_v52 }
 0x398   :  { %v331_v56 = vmul.f32 %v329_v53, %v243_v39 }
 0x404   :  { %v334_v54 = vpop.permute.xlu1 %333 }
 0x405   :  { %v336_v55 = vmul.f32 %v334_v54, %v329_v53 }
 0x407   :  { %338 = vrot.lane.b32.xlu0 %v336_v55, %s1054_s4 }
 0x479   :  { %v339_v57 = vpop.permute.xlu0 %338 }
 0x47a   :  { %v341_v58 = vadd.f32 %v339_v57, %v331_v56 }
 0x47c   :  { %1020 = vtanh.f32 %v341_v58 }
 0x489   :  { %v1021_v59 = vpop.eup %1020 }
 0x48a   :  { %344 = vrot.lane.b32.xlu1 %v1021_v59, %s1054_s4 }
 0x4fc   :  { %v345_v60 = vpop.permute.xlu1 %344 }
 0x4fd   :  { %v347_v61 = vmul.f32 %v345_v60, %v329_v53 }
 0x4ff   :  { %349 = vrot.lane.b32.xlu0 %v347_v61, %s1055_s2 }
 0x571   :  { %v350_v62 = vpop.permute.xlu0 %349 }
 0x572   :  { %954 = vmatmul.mubr.msk.f32.vlgmr.msra.gmra.mxu0 %vm149_vm2, %v350_v62 }
 0x573   :  { %968 = vmatpush3.msra.mxu0 %v1113_v4  ;;  %975 = vmatprep.mubr.msk.f32.mxu0 %vm1053_vm1, %v1052_v1 }
 0x574   :  { %969 = vmatprep.subr.mxu0 %v1052_v1 }
 0x575   :  { %970 = vmatpush3.msra.mxu0 %v1118_v5 }
 0x576   :  { %971 = vmatprep.subr.mxu0 %v1052_v1 }
 0x577   :  { %972 = vmatpush3.msra.mxu0 %v1129_v7 }
 0x578   :  { %973 = vmatprep.subr.mxu0 %v1052_v1 }
 0x579   :  { %974 = vmatpush3.msra.mxu0 %v1138_v8 }
 0x57a   :  { %989 = vmatprep.subr.mxu0 %v1052_v1 }
 0x632   :  { %v419_v63 = vpop.f32.mrf.mxu0 }
 0x633   :  { %v423_v0 = vadd.f32 %v419_v63, %v1183_v26 }
 0x634   :  { %v955_v2 = vpop.f32.mrf.mxu0 }
 0x635   :  { %1022 = vtanh.f32 %v423_v0  ;;  %v424_v6 = vmul.f32 0.5, %v423_v0 }
 0x637   :  { %1024 = vtanh.f32 %v424_v6 }
 0x642   :  { %v1023_v3 = vpop.eup %1022 }
 0x643   :  { %431 = vrot.lane.b32.xlu1 %v1023_v3, %s1054_s4 }
 0x644   :  { %v1025_v9 = vpop.eup %1024 }
 0x645   :  { %v426_v10 = vadd.f32 1.0, %v1025_v9 }
 0x647   :  { %v427_v11 = vmul.f32 0.5, %v426_v10 }
 0x649   :  { %v429_v16 = vmul.f32 %v427_v11, %v341_v58 }
 0x6b5   :  { %v432_v12 = vpop.permute.xlu1 %431 }
 0x6b6   :  { %v434_v14 = vmul.f32 %v432_v12, %v427_v11 }
 0x6b8   :  { %436 = vrot.lane.b32.xlu0 %v434_v14, %s1054_s4 }
 0x72a   :  { %v437_v18 = vpop.permute.xlu0 %436 }
 0x72b   :  { %v439_v19 = vadd.f32 %v437_v18, %v429_v16 }
 0x72d   :  { %1026 = vtanh.f32 %v439_v19 }
 0x73a   :  { %v1027_v21 = vpop.eup %1026 }
 0x73b   :  { %442 = vrot.lane.b32.xlu1 %v1027_v21, %s1054_s4 }
 0x7ad   :  { %v443_v22 = vpop.permute.xlu1 %442 }
 0x7ae   :  { %v445_v23 = vmul.f32 %v443_v22, %v427_v11 }
 0x7b0   :  { %447 = vrot.lane.b32.xlu0 %v445_v23, %s1055_s2 }
 0x822   :  { %v448_v24 = vpop.permute.xlu0 %447 }
 0x823   :  { %965 = vmatmul.mubr.msk.f32.vlgmr.msra.gmra.mxu1 %vm149_vm2, %v448_v24 }
 0x824   :  { %979 = vmatpush3.msra.mxu1 %v1113_v4  ;;  %986 = vmatprep.mubr.msk.f32.mxu1 %vm1053_vm1, %v1052_v1 }
 0x825   :  { %980 = vmatprep.subr.mxu1 %v1052_v1 }
 0x826   :  { %981 = vmatpush3.msra.mxu1 %v1118_v5 }
 0x827   :  { %982 = vmatprep.subr.mxu1 %v1052_v1 }
 0x828   :  { %983 = vmatpush3.msra.mxu1 %v1129_v7 }
 0x829   :  { %984 = vmatprep.subr.mxu1 %v1052_v1 }
 0x82a   :  { %985 = vmatpush3.msra.mxu1 %v1138_v8 }
 0x8e3   :  { %v517_v25 = vpop.f32.mrf.mxu1 }
 0x8e4   :  { %v521_v26 = vadd.f32 %v517_v25, %v1179_v17 }
 0x8e5   :  { %v966_v27 = vpop.f32.mrf.mxu1 }
 0x8e6   :  { %1028 = vtanh.f32 %v521_v26  ;;  %v522_v29 = vmul.f32 0.5, %v521_v26 }
 0x8e8   :  { %1030 = vtanh.f32 %v522_v29 }
 0x8f3   :  { %v1029_v28 = vpop.eup %1028 }
 0x8f4   :  { %529 = vrot.lane.b32.xlu1 %v1029_v28, %s1054_s4 }
 0x8f5   :  { %v1031_v30 = vpop.eup %1030 }
 0x8f6   :  { %v524_v31 = vadd.f32 1.0, %v1031_v30 }
 0x8f8   :  { %v525_v32 = vmul.f32 0.5, %v524_v31 }
 0x8fa   :  { %v527_v35 = vmul.f32 %v525_v32, %v439_v19 }
 0x966   :  { %v530_v33 = vpop.permute.xlu1 %529 }
 0x967   :  { %v532_v34 = vmul.f32 %v530_v33, %v525_v32 }
 0x969   :  { %534 = vrot.lane.b32.xlu0 %v532_v34, %s1054_s4 }
 0x9db   :  { %v535_v36 = vpop.permute.xlu0 %534 }
 0x9dc   :  { %v537_v37 = vadd.f32 %v535_v36, %v527_v35 }
 0x9de   :  { %1032 = vtanh.f32 %v537_v37 }
 0x9eb   :  { %v1033_v38 = vpop.eup %1032 }
 0x9ec   :  { %540 = vrot.lane.b32.xlu1 %v1033_v38, %s1054_s4 }
 0xa5e   :  { %v541_v17 = vpop.permute.xlu1 %540 }
 0xa5f   :  { %v543_v39 = vmul.f32 %v541_v17, %v525_v32 }
 0xa61   :  { %545 = vrot.lane.b32.xlu0 %v543_v39, %s1055_s2 }
 0xad3   :  { %v546_v40 = vpop.permute.xlu0 %545 }
 0xad4   :  { %976 = vmatmul.mubr.msk.f32.vlgmr.msra.gmra.mxu0 %vm149_vm2, %v546_v40 }
 0xad5   :  { %990 = vmatpush3.msra.mxu0 %v1113_v4  ;;  %997 = vmatprep.mubr.msk.f32.mxu0 %vm1053_vm1, %v1052_v1 }
 0xad6   :  { %991 = vmatprep.subr.mxu0 %v1052_v1 }
 0xad7   :  { %992 = vmatpush3.msra.mxu0 %v1118_v5 }
 0xad8   :  { %993 = vmatprep.subr.mxu0 %v1052_v1 }
 0xad9   :  { %994 = vmatpush3.msra.mxu0 %v1129_v7 }
 0xada   :  { %995 = vmatprep.subr.mxu0 %v1052_v1 }
 0xadb   :  { %996 = vmatpush3.msra.mxu0 %v1138_v8 }
 0xb94   :  { %v615_v41 = vpop.f32.mrf.mxu0 }
 0xb95   :  { %v619_v42 = vadd.f32 %v615_v41, %v1175_v13 }
 0xb96   :  { %v977_v43 = vpop.f32.mrf.mxu0 }
 0xb97   :  { %1034 = vtanh.f32 %v619_v42  ;;  %v620_v44 = vmul.f32 0.5, %v619_v42 }
 0xb99   :  { %1036 = vtanh.f32 %v620_v44 }
 0xba4   :  { %v1035_v4 = vpop.eup %1034 }
 0xba5   :  { %627 = vrot.lane.b32.xlu1 %v1035_v4, %s1054_s4 }
 0xba6   :  { %v1037_v45 = vpop.eup %1036 }
 0xba7   :  { %v622_v5 = vadd.f32 1.0, %v1037_v45 }
 0xba9   :  { %v623_v46 = vmul.f32 0.5, %v622_v5 }
 0xbab   :  { %v625_v1 = vmul.f32 %v623_v46, %v537_v37 }
 0xc17   :  { %v628_v47 = vpop.permute.xlu1 %627 }
 0xc18   :  { %v630_v48 = vmul.f32 %v628_v47, %v623_v46 }
 0xc1a   :  { %632 = vrot.lane.b32.xlu0 %v630_v48, %s1054_s4 }
 0xc8c   :  { %v633_v7 = vpop.permute.xlu0 %632 }
 0xc8d   :  { %v635_v8 = vadd.f32 %v633_v7, %v625_v1 }
 0xc8f   :  { %1038 = vtanh.f32 %v635_v8 }
 0xc9c   :  { %v1039_v49 = vpop.eup %1038 }
 0xc9d   :  { %638 = vrot.lane.b32.xlu1 %v1039_v49, %s1054_s4 }
 0xd0f   :  { %v639_v13 = vpop.permute.xlu1 %638 }
 0xd10   :  { %v641_v50 = vmul.f32 %v639_v13, %v623_v46 }
 0xd12   :  { %643 = vrot.lane.b32.xlu0 %v641_v50, %s1055_s2 }
 0xd84   :  { %v644_v51 = vpop.permute.xlu0 %643 }
 0xd85   :  { %987 = vmatmul.mubr.msk.f32.vlgmr.msra.gmra.mxu1 %vm149_vm2, %v644_v51 }
 0xe45   :  { %v713_v52 = vpop.f32.mrf.mxu1 }
 0xe46   :  { %v717_v53 = vadd.f32 %v713_v52, %v1181_v20 }
 0xe47   :  { %v988_v54 = vpop.f32.mrf.mxu1 }
 0xe48   :  { %1040 = vtanh.f32 %v717_v53  ;;  %v718_v56 = vmul.f32 0.5, %v717_v53 }
 0xe4a   :  { %1042 = vtanh.f32 %v718_v56 }
 0xe55   :  { %v1041_v55 = vpop.eup %1040 }
 0xe56   :  { %725 = vrot.lane.b32.xlu1 %v1041_v55, %s1054_s4 }
 0xe57   :  { %v1043_v57 = vpop.eup %1042 }
 0xe58   :  { %v720_v58 = vadd.f32 1.0, %v1043_v57 }
 0xe5a   :  { %v721_v59 = vmul.f32 0.5, %v720_v58 }
 0xe5c   :  { %v723_v62 = vmul.f32 %v721_v59, %v635_v8 }
 0xec8   :  { %v726_v60 = vpop.permute.xlu1 %725 }
 0xec9   :  { %v728_v61 = vmul.f32 %v726_v60, %v721_v59 }
 0xecb   :  { %730 = vrot.lane.b32.xlu0 %v728_v61, %s1054_s4 }
 0xf3d   :  { %v731_v63 = vpop.permute.xlu0 %730 }
 0xf3e   :  { %v733_v0 = vadd.f32 %v731_v63, %v723_v62 }
 0xf40   :  { %1044 = vtanh.f32 %v733_v0 }
 0xf4d   :  { %v1045_v2 = vpop.eup %1044 }
 0xf4e   :  { %736 = vrot.lane.b32.xlu1 %v1045_v2, %s1054_s4 }
 0xfc0   :  { %v737_v20 = vpop.permute.xlu1 %736 }
 0xfc1   :  { %v739_v3 = vmul.f32 %v737_v20, %v721_v59 }
 0xfc3   :  { %741 = vrot.lane.b32.xlu0 %v739_v3, %s1055_s2 }
0x1035   :  { %v742_v6 = vpop.permute.xlu0 %741 }
0x1036   :  { %998 = vmatmul.mubr.msk.f32.vlgmr.msra.gmra.mxu0 %vm149_vm2, %v742_v6 }
0x10f6   :  { %v811_v9 = vpop.f32.mrf.mxu0 }
0x10f7   :  { %v815_v10 = vadd.f32 %v811_v9, %v1177_v15 }
0x10f8   :  { %v999_v11 = vpop.f32.mrf.mxu0 }
0x10f9   :  { %1046 = vtanh.f32 %v815_v10  ;;  %v816_v14 = vmul.f32 0.5, %v815_v10 }
0x10fb   :  { %1048 = vtanh.f32 %v816_v14 }
0x1106   :  { %v1047_v12 = vpop.eup %1046 }
0x1107   :  { %823 = vrot.lane.b32.xlu1 %v1047_v12, %s1054_s4 }
0x1108   :  { %v1049_v16 = vpop.eup %1048 }
0x1109   :  { %v818_v18 = vadd.f32 1.0, %v1049_v16 }
0x110b   :  { %v819_v19 = vmul.f32 0.5, %v818_v18 }
0x110d   :  { %v821_v23 = vmul.f32 %v819_v19, %v733_v0 }
0x1179   :  { %v824_v21 = vpop.permute.xlu1 %823 }
0x117a   :  { %v826_v22 = vmul.f32 %v824_v21, %v819_v19 }
0x117c   :  { %828 = vrot.lane.b32.xlu0 %v826_v22, %s1054_s4 }
0x11ee   :  { %v829_v24 = vpop.permute.xlu0 %828 }
0x11ef   :  { %v831_v25 = vadd.f32 %v829_v24, %v821_v23 }
0x11f1   :  { %1050 = vtanh.f32 %v831_v25 }
0x11fe   :  { %v1051_v26 = vpop.eup %1050 }
0x11ff   :  { %834 = vrot.lane.b32.xlu1 %v1051_v26, %s1054_s4 }
0x1203   :  { %844 = vrot.lane.b32.xlu1 %v831_v25, %s1056_s21 }
0x1271   :  { %v835_v15 = vpop.permute.xlu1 %834 }
0x1272   :  { %v837_v27 = vmul.f32 %v835_v15, %v819_v19 }
0x1274   :  { %839 = vrot.lane.b32.xlu0 %v837_v27, %s1055_s2 }
0x1275   :  { %v845_v28 = vpop.permute.xlu1 %844 }
0x1276   :  { %847 = vst.msk [vmem:[%s1280_s7] sm:$0xff] %vm149_vm2, %v845_v28 }
0x12e6   :  { %v840_v29 = vpop.permute.xlu0 %839 }
0x12e7   :  { %842 = vst.msk [vmem:[%s1281_s6] sm:$0xff] %vm149_vm2, %v840_v29 }

</bundles_post_ra>
